<compile_context>
chip_gen: v6e
topology: v6e:2x2x1
jax: 0.10.0
libtpu: 0.0.40
codegen_flags: <defaults>
</compile_context>

<pallas_src>
import functools
import math

import numpy as np

import jax
import jax.numpy as jnp
from jax.experimental import pallas as pl
from jax.experimental.pallas import tpu as pltpu


def _lcm(a: int, b: int) -> int:
    return a * b // math.gcd(a, b)


def _largest_divisor_leq(n: int, cap: int) -> int:
    cap = max(1, min(cap, n))
    for d in range(cap, 0, -1):
        if n % d == 0:
            return d
    return 1


# ----------------------------------------------------------------------------
# Fast path: lane-dense flat layout (W divides 128, H*W multiple of 128).
# ----------------------------------------------------------------------------
def _tv_flat_kernel(x_ref, cmask_ref, rmask_ref, o_ref, *, w, chunk_rows):
    """(block_rows, 128) flat block -> (8, 128) partial sum of squared diffs."""
    block_rows = x_ref.shape[0]
    n_chunks = block_rows // chunk_rows

    cmask = cmask_ref[...]          # (1, 128)          zero at lane % w == 0
    rmask = rmask_ref[...]          # (chunk_rows, 128) zero at plane-first-row
    if w < 128:
        # lanes < w need the previous 128-lane row for the vertical neighbour
        low = jax.lax.broadcasted_iota(jnp.int32, (chunk_rows, 128), 1) < w
    else:
        low = None

    def tv_partial(xc):
        if xc.dtype != jnp.float32:
            xc = xc.astype(jnp.float32)
        # Horizontal neighbour: previous flat element = lane-roll by 1 (XLU).
        dw = pltpu.roll(xc, shift=1, axis=1) - xc
        # Vertical neighbour: flat element w positions earlier.
        y = xc if w == 128 else pltpu.roll(xc, shift=w, axis=1)
        z = pltpu.roll(y, shift=1, axis=0)
        prev = z if low is None else jnp.where(low, z, y)
        dh = prev - xc
        # Constant masks fused as multiplies (seam / wrap-around columns+rows).
        sq = dw * dw * cmask + dh * dh * rmask
        # Leading-axis reduce: pure vreg adds, result stays (8, 128) aligned.
        return jnp.sum(sq.reshape(chunk_rows // 8, 8, 128), axis=0)

    if n_chunks == 1:
        o_ref[...] = tv_partial(x_ref[...])
    else:
        def body(i, acc):
            start = pl.multiple_of(i * chunk_rows, 8)
            return acc + tv_partial(x_ref[pl.ds(start, chunk_rows), :])

        o_ref[...] = jax.lax.fori_loop(
            0, n_chunks, body, jnp.zeros((8, 128), jnp.float32),
            unroll=n_chunks <= 8)


def _tv_flat(x, tv_weight, *, rpp, unit):
    n, c, h, w = x.shape
    R = n * c * rpp
    xf = x.reshape(R, 128)                      # contiguous view: no HBM copy

    itemsize = x.dtype.itemsize
    unit_bytes = unit * 128 * itemsize

    # ~4 MiB DMA blocks; keep >= 2 grid steps when possible (v7x has 2 TCs).
    total_units = R // unit
    target_units = max(1, (4 << 20) // unit_bytes)
    cap = target_units
    if total_units >= 2:
        cap = min(cap, max(1, total_units // 2))
    units_per_block = _largest_divisor_leq(total_units, cap)
    block_rows = units_per_block * unit
    num_blocks = total_units // units_per_block

    # In-kernel chunk (<= ~1024 rows) keeps f32 temporaries small no matter how
    # big the DMA block is (decouples VMEM intermediates from block size).
    chunk_units = _largest_divisor_leq(units_per_block, max(1, 1024 // unit))
    chunk_rows = chunk_units * unit

    # Trace-time constant masks.
    lanes = np.arange(128)
    cmask = (lanes % w != 0).astype(np.float32)[None, :]            # (1, 128)
    rows = np.arange(chunk_rows)
    rmask = ~(((rows[:, None] % rpp) == 0) & (lanes[None, :] < w))   # plane 1st row
    rmask = rmask.astype(np.float32)                                 # (chunk_rows, 128)

    kernel = functools.partial(_tv_flat_kernel, w=w, chunk_rows=chunk_rows)
    out = pl.pallas_call(
        kernel,
        out_shape=jax.ShapeDtypeStruct((num_blocks * 8, 128), jnp.float32),
        grid_spec=pltpu.PrefetchScalarGridSpec(
            num_scalar_prefetch=0,
            grid=(num_blocks,),
            in_specs=[
                pl.BlockSpec((block_rows, 128), lambda i: (i, 0)),
                pl.BlockSpec((1, 128), lambda i: (0, 0)),           # fetched once
                pl.BlockSpec((chunk_rows, 128), lambda i: (0, 0)),  # fetched once
            ],
            out_specs=pl.BlockSpec((8, 128), lambda i: (i, 0)),
        ),
        compiler_params=pltpu.CompilerParams(
            dimension_semantics=("parallel",),
            vmem_limit_bytes=32 * 1024 * 1024,
        ),
    )(xf, jnp.asarray(cmask), jnp.asarray(rmask))

    # Tiny final reduction over the per-block (8, 128) partials, in f32.
    return jnp.asarray(tv_weight, jnp.float32) * jnp.sum(out)


# ----------------------------------------------------------------------------
# Fallback path: per-plane blocks, any (H, W).
# ----------------------------------------------------------------------------
def _tv_plane_kernel(x_ref, o_ref):
    @pl.when(pl.program_id(0) == 0)
    def _init():
        o_ref[...] = jnp.zeros_like(o_ref)

    x = x_ref[...]
    if x.dtype != jnp.float32:
        x = x.astype(jnp.float32)
    partial = jnp.zeros((), jnp.float32)
    if x.shape[2] > 1:
        dw = x[:, :, 1:] - x[:, :, :-1]
        partial = partial + jnp.sum(dw * dw)
    if x.shape[1] > 1:
        dh = x[:, 1:, :] - x[:, :-1, :]
        partial = partial + jnp.sum(dh * dh)

    r = jax.lax.broadcasted_iota(jnp.int32, (8, 128), 0)
    c = jax.lax.broadcasted_iota(jnp.int32, (8, 128), 1)
    o_ref[...] = o_ref[...] + jnp.where((r == 0) & (c == 0), partial, 0.0)


def _tv_planes(x, tv_weight):
    # TODO(synk): planes with W a multiple of 128 (e.g. 256x256) could also get
    # a lane-dense flat fast path; this general fallback keeps full-plane blocks.
    n, c, h, w = x.shape
    nc = n * c
    planes = x.reshape(nc, h, w)
    plane_bytes = h * w * x.dtype.itemsize
    p = _largest_divisor_leq(nc, max(1, (2 << 20) // max(plane_bytes, 1)))
    num_blocks = nc // p

    out = pl.pallas_call(
        _tv_plane_kernel,
        out_shape=jax.ShapeDtypeStruct((8, 128), jnp.float32),
        grid_spec=pltpu.PrefetchScalarGridSpec(
            num_scalar_prefetch=0,
            grid=(num_blocks,),
            in_specs=[pl.BlockSpec((p, h, w), lambda i: (i, 0, 0))],
            out_specs=pl.BlockSpec((8, 128), lambda i: (0, 0)),
        ),
        compiler_params=pltpu.CompilerParams(
            dimension_semantics=("arbitrary",),
            vmem_limit_bytes=32 * 1024 * 1024,
        ),
    )(planes)
    return jnp.asarray(tv_weight, jnp.float32) * jnp.sum(out)


# ----------------------------------------------------------------------------
# Public entry point: Pallas equivalent of TotalVariationLoss(tv_weight)(x).
# ----------------------------------------------------------------------------
def total_variation_loss(x: jax.Array, tv_weight: float = 1.0) -> jax.Array:
    n, c, h, w = x.shape
    if n * c == 0 or h * w == 0:
        return jnp.zeros((), jnp.float32)

    itemsize = x.dtype.itemsize
    if w <= 128 and 128 % w == 0 and (h * w) % 128 == 0:
        rpp = (h * w) // 128                      # 128-lane rows per plane
        sub_align = max(8, 32 // itemsize)        # 8 f32 / 16 bf16 / 32 int8
        unit = _lcm(rpp, sub_align)               # plane- & tile-aligned row unit
        total_rows = n * c * rpp
        if total_rows % unit == 0 and unit <= 2048:
            return _tv_flat(x, tv_weight, rpp=rpp, unit=unit)
    return _tv_planes(x, tv_weight)


def _tv_loss_ref(x: jax.Array, tv_weight: float) -> jax.Array:
    w_var = jnp.sum(jnp.square(x[:, :, :, :-1] - x[:, :, :, 1:]))
    h_var = jnp.sum(jnp.square(x[:, :, :-1, :] - x[:, :, 1:, :]))
    return tv_weight * (h_var + w_var)


if __name__ == "__main__":
    key = jax.random.PRNGKey(0)
    x = jax.random.normal(key, (2, 4, 16, 16), dtype=jnp.float32)
    tv_weight = 1.0

    loss = total_variation_loss(x, tv_weight)
    jax.block_until_ready(loss)

    ref = _tv_loss_ref(x, tv_weight)
    assert jnp.allclose(loss, ref, rtol=1e-5, atol=1e-5), (loss, ref)
    print("KERNEL_OK")
</pallas_src>

<mosaic_0001>
module attributes {stable_mosaic.version = 11 : i64} {
  func.func @_tv_flat_kernel(%arg0: i32, %arg1: memref<8x128xf32, #tpu.memory_space<vmem>>, %arg2: memref<1x128xf32, #tpu.memory_space<vmem>>, %arg3: memref<8x128xf32, #tpu.memory_space<vmem>>, %arg4: memref<8x128xf32, #tpu.memory_space<vmem>>) attributes {dimension_semantics = [#tpu.dimension_semantics<parallel>], iteration_bounds = array<i64: 2>, scalar_prefetch = 0 : i64, scratch_operands = 0 : i64, tpu.core_type = #tpu.core_type<tc>, window_params = [{transform_indices = @transform_0, window_bounds = array<i64: 8, 128>}, {pipeline_mode = #tpu.pipeline_mode<synchronous>, transform_indices = @transform_1, window_bounds = array<i64: 1, 128>}, {pipeline_mode = #tpu.pipeline_mode<synchronous>, transform_indices = @transform_2, window_bounds = array<i64: 8, 128>}, {transform_indices = @transform_3, window_bounds = array<i64: 8, 128>}]} {
    %c0 = arith.constant 0 : index
    %c0_0 = arith.constant 0 : index
    %0 = vector.load %arg2[%c0, %c0_0] : memref<1x128xf32, #tpu.memory_space<vmem>>, vector<1x128xf32>
    %c0_1 = arith.constant 0 : index
    %c0_2 = arith.constant 0 : index
    %1 = vector.load %arg3[%c0_1, %c0_2] : memref<8x128xf32, #tpu.memory_space<vmem>>, vector<8x128xf32>
    %2 = tpu.iota {dimensions = array<i32: 1>} : vector<8x128xi32>
    %c16_i32 = arith.constant 16 : i32
    %3 = vector.broadcast %c16_i32 : i32 to vector<8x128xi32>
    %4 = arith.cmpi slt, %2, %3 : vector<8x128xi32>
    %c0_3 = arith.constant 0 : index
    %c0_4 = arith.constant 0 : index
    %5 = vector.load %arg1[%c0_3, %c0_4] : memref<8x128xf32, #tpu.memory_space<vmem>>, vector<8x128xf32>
    %c1_i32 = arith.constant 1 : i32
    %6 = tpu.dynamic_rotate %5 by %c1_i32 dim 1 : vector<8x128xf32>, i32 -> vector<8x128xf32>
    %7 = arith.subf %6, %5 : vector<8x128xf32>
    %c16_i32_5 = arith.constant 16 : i32
    %8 = tpu.dynamic_rotate %5 by %c16_i32_5 dim 1 : vector<8x128xf32>, i32 -> vector<8x128xf32>
    %c1_i32_6 = arith.constant 1 : i32
    %9 = tpu.dynamic_rotate %8 by %c1_i32_6 dim 0 : vector<8x128xf32>, i32 -> vector<8x128xf32>
    %10 = arith.select %4, %9, %8 : vector<8x128xi1>, vector<8x128xf32>
    %11 = arith.subf %10, %5 : vector<8x128xf32>
    %12 = arith.mulf %7, %7 : vector<8x128xf32>
    %13 = vector.broadcast %0 : vector<1x128xf32> to vector<8x128xf32>
    %14 = arith.mulf %12, %13 : vector<8x128xf32>
    %15 = arith.mulf %11, %11 : vector<8x128xf32>
    %16 = arith.mulf %15, %1 : vector<8x128xf32>
    %17 = arith.addf %14, %16 : vector<8x128xf32>
    %18 = vector.shape_cast %17 : vector<8x128xf32> to vector<1x8x128xf32>
    %cst = arith.constant dense<0.000000e+00> : vector<8x128xf32>
    %19 = vector.multi_reduction <add>, %18, %cst [0] : vector<1x8x128xf32> to vector<8x128xf32>
    %c0_7 = arith.constant 0 : index
    %c0_8 = arith.constant 0 : index
    %20 = vector.load %arg4[%c0_7, %c0_8] : memref<8x128xf32, #tpu.memory_space<vmem>>, vector<8x128xf32>
    tpu.vector_store %arg4[%c0_7, %c0_8], %19 {strides = array<i32>} : memref<8x128xf32, #tpu.memory_space<vmem>>, vector<8x128xf32>,
    return
  }
  func.func @transform_0(%arg0: i32) -> (i32, i32) {
    %c0_i32 = arith.constant 0 : i32
    %c0_i32_0 = arith.constant 0 : i32
    return %arg0, %c0_i32 : i32, i32
  }
  func.func @transform_1(%arg0: i32) -> (i32, i32) {
    %c0_i32 = arith.constant 0 : i32
    %c0_i32_0 = arith.constant 0 : i32
    %c0_i32_1 = arith.constant 0 : i32
    return %c0_i32, %c0_i32_0 : i32, i32
  }
  func.func @transform_2(%arg0: i32) -> (i32, i32) {
    %c0_i32 = arith.constant 0 : i32
    %c0_i32_0 = arith.constant 0 : i32
    %c0_i32_1 = arith.constant 0 : i32
    return %c0_i32, %c0_i32_0 : i32, i32
  }
  func.func @transform_3(%arg0: i32) -> (i32, i32) {
    %c0_i32 = arith.constant 0 : i32
    %c0_i32_0 = arith.constant 0 : i32
    return %arg0, %c0_i32 : i32, i32
  }
}

</mosaic_0001>

<bundles_post_ra>
// kernel: tpu_custom_call.1
= control target key start
LH: loop header
LB: loop body
LE: loop exit
PB: predicated region body
PF: predicated region fallthrough
CT: control target
= control target key end

     0   :  { %8 = vsyncpa [#allocation3], 0  ;;  %s712_s0 = inlined_call_operand.hbm [shape: f32[16,128], index: 0, kind: input, shape index: {}]   ;;  %s713_s1 = inlined_call_operand.vmem [shape: f32[1,128], index: 1, kind: input, shape index: {}]   ;;  %s714_s2 = inlined_call_operand.hbm [shape: f32[8,128], index: 2, kind: input, shape index: {}]   ;;  %s715_s3 = inlined_call_operand.hbm [shape: f32[16,128], index: 3, kind: output, shape index: {}]  }
   0x1   :  { %10 = vsyncpa [#allocation3 + $0x1], 0 }
   0x2   :  { %11 = vsyncpa [#allocation6], 0 }
   0x3   :  { %12 = vsyncpa [#allocation4], 0 }
   0x4   :  { %14 = vsyncpa [#allocation4 + $0x1], 0  ;;  %s543_s12 = smov 0   ;;  %s545_s13 = smov 0  }
   0x5   :  { %s547_s14 = smov 0   ;;  %s549_s15 = smov 0  }
   0x6 LB: > { %s564_s16 = sadd.s32 4294967295, %s516_s15   ;;  %s320_s17 = sadd.s32 4294967294, %s516_s15   ;;  %s516_s15 = sphi %s549_s15, %s738_s15   ;;  %s512_s14 = sphi %s547_s14, %s737_s14   ;;  %s508_s13 = sphi %s545_s13, %s736_s13   ;;  %s504_s12 = sphi %s543_s12, %s735_s12  }
   0x7   : > { %p40_p0 = scmp.ne.s32.totalorder %s508_s13, %s504_s12  ;;  %p716_p1 = scmp.eq.s32.totalorder %s564_s16, 0 }
   0x8   : > { %p112_p3 = scmp.eq.s32.totalorder %s320_s17, 1  ;;  %p321_p5 = scmp.ge.s32.totalorder %s516_s15, 1 }
   0x9   : > { %p573_p4 = por %p716_p1, %p40_p0  ;;  %p119_p7 = scmp.lt.s32.totalorder %s516_s15, 3 }
   0xa   : > { %p578_p6 = por %p112_p3, %p40_p0  ;;  %s518_s21 = smov [#allocation5]  }
   0xb   : > { %s720_s18 = scalar_select %p573_p4, 1, 0 }
   0xc   : > { %s721_s19 = scalar_select %p578_p6, 1, 0 }
   0xd   : > { %p583_p8 = pnand %p321_p5, %p119_p7  ;;  %s135_s22 = sshll.u32 %s518_s21, 4  ;;  %s136_s22 = int_to_ptr.vmem [resolvable:$true] %s135_s22 }
   0xe   : > { %s591_s23 = sadd.s32 1, %s516_s15   ;;  %s27_s27 = sadd.s32 1, %s512_s14 }
   0xf   : > { %s722_s20 = scalar_select %p583_p8, 1, 0 }
  0x10   : > { %p343_p10 = pneg %p583_p8  ;;  %s24_s25 = ssub.s32 %s516_s15, %s591_s23 }
  0x11   : > { %p601_p12 = scmp.eq.s32.totalorder %s24_s25, 0  ;;  %p34_p13 = scmp.ne.s32.totalorder %s512_s14, %s508_s13 }
  0x12   : > { %p595_p11 = pnand %p343_p10, %p716_p1  ;;  %s405_s28 = scalar_lea.vmem %s136_s22, 128 }
  0x13   : > { %p406_p3 = scmp.ne.s32.totalorder %s136_s22, %s405_s28  ;;  %p413_p9 = scmp.lt.s32.totalorder %s136_s22, %s136_s22 }
  0x14   : > { %p396_p0 = pneg %p595_p11  ;;  %p414_p2 = scmp.lt.s32.totalorder %s405_s28, %s405_s28 }
  0x16   : > { %p408_p5 = pnand %p406_p3, %p396_p0  ;;  %p415_p10 = por %p414_p2, %p413_p9 }
  0x18   : > { %p409_p7 = pneg %p408_p5 }
  0x1a   : > { %p416_p1 = pnand %p415_p10, %p409_p7 }
  0x1c   : > { %419 = shalt.err (!%p416_p1)
}
  0x1d   : > { %346 = dma.hbm_to_vmem [thread:$0]  (!%p595_p11), %s714_s2, 128, %s136_s22, [#allocation6]  }
  0x1e   : > { %s618_s4 = scalar_select %p601_p12, %s512_s14, %s27_s27  }
  0x1f   : > { %p35_p1 = scmp.eq.s32.totalorder %s516_s15, 0  ;;  %p725_p2 = scmp.eq.s32.totalorder %s564_s16, 1 }
  0x20   : > { %p356_p0 = scmp.lt.s32.totalorder %s516_s15, 2  ;;  %s146_s6 = sand.u32 1, %s512_s14  }
  0x21   : > { %p626_p9 = por %p725_p2, %p34_p13  ;;  %p36_p3 = por %p35_p1, %p34_p13 }
  0x22   : > { %s324_s7 = sshll.u32 %s146_s6, 3  ;;  %s325_s8 = sshll.u32 %s516_s15, 7 }
  0x23   : > { %s726_s5 = scalar_select %p626_p9, 1, 0 }
  0x24   : > { %s639_s11 = scalar_lea.hbm %s712_s0, %s325_s8  ;;  %s150_s17 = scalar_lea.vmem [#allocation2], %s324_s7 }
  0x25   : > { %s157_s21 = sshll.u32 %s150_s17, 4  ;;  %p641_p11 = pnand %p356_p0, %p36_p3  ;;  %s158_s21 = int_to_ptr.vmem [resolvable:$true] %s157_s21 }
  0x26   : > { %s147_s24 = scalar_lea.sflag [#allocation3], %s146_s6  ;;  %s420_s25 = scalar_lea.hbm %s639_s11, 128 }
  0x27   : > { %p421_p12 = scmp.ne.s32.totalorder %s639_s11, %s420_s25  ;;  %p422_p13 = pneg %p641_p11 }
  0x28   : > { %s425_s28 = scalar_lea.hbm %s712_s0, 256  ;;  %p426_p10 = scmp.lt.s32.totalorder %s639_s11, %s712_s0 }
  0x29   : > { %p423_p5 = pnand %p422_p13, %p421_p12  ;;  %p427_p1 = scmp.lt.s32.totalorder %s425_s28, %s420_s25 }
  0x2b   : > { %p424_p7 = pneg %p423_p5  ;;  %p428_p2 = por %p427_p1, %p426_p10 }
  0x2d   : > { %p429_p0 = pnand %p428_p2, %p424_p7 }
  0x2f   : > { %432 = shalt.err (!%p429_p0)
}
  0x30   : > { %s433_s7 = scalar_lea.vmem %s158_s21, 128  ;;  %s519_s6 = smov [#allocation2]  }
  0x31   : > { %p434_p3 = scmp.ne.s32.totalorder %s158_s21, %s433_s7  ;;  %s438_s8 = sshll.u32 %s519_s6, 4  ;;  %s439_s8 = int_to_ptr.vmem [resolvable:$false] %s438_s8 }
  0x32   : > { %s440_s9 = scalar_lea.vmem %s439_s8, 256  ;;  %p441_p12 = scmp.lt.s32.totalorder %s158_s21, %s439_s8 }
  0x33   : > { %p436_p6 = pnand %p434_p3, %p422_p13  ;;  %p442_p5 = scmp.lt.s32.totalorder %s440_s9, %s433_s7 }
  0x35   : > { %p437_p9 = pneg %p436_p6  ;;  %p443_p4 = por %p442_p5, %p441_p12 }
  0x37   : > { %p444_p8 = pnand %p443_p4, %p437_p9 }
  0x39   : > { %447 = shalt.err (!%p444_p8)
}
  0x3a   : > { %350 = dma.hbm_to_vmem [thread:$0]  (!%p641_p11), %s639_s11, 128, %s158_s21, %s147_s24  }
  0x3b   : > { %p728_p7 = scmp.ne.s32.totalorder %s722_s20, 0 }
  0x3c   : > { %s662_s10 = sand.u32 (!%p728_p7), 1, %s508_s13   ;;  %p729_p6 = scmp.ne.s32.totalorder (!%p728_p7), %s720_s18, 0 }
  0x3d   : > { %166 = sbr.rel (%p728_p7) target bundleno = 211 (0xd3), region = 32  ;;  %s327_s17 = sshll.u32 (!%p728_p7), %s662_s10, 3 }
  0x3e   : > { %s169_s25 = scalar_lea.sflag (!%p728_p7), [#allocation3], %s662_s10  ;;  %s172_s26 = scalar_lea.vmem (!%p728_p7), [#allocation2], %s327_s17 }
  0x42   : > { %491 = dma.done.wait (%p729_p6), %s169_s25, 128  }
  0x43   : > { %493 = vsyncadd (%p729_p6), %s169_s25, 4294967168  ;;  %p730_p4 = scmp.eq.s32.totalorder %s564_s16, 0 }
  0x45   : > { %495 = dma.done.wait (%p730_p4), [#allocation6], 128   ;;  %p731_p8 = pmov %p730_p4 }
  0x46   : > { %v204_v0 = vld [vmem:[%s172_s26] sm:$0xff]  ;;  %s520_s20 = smov 16   ;;  %s521_s11 = smov 1   ;;  %v201_v1 = vlaneseq  ;;  %v200_v8 = vld [vmem:[#allocation5] sm:$0xff] }
  0x47   : > { %497 = vsyncadd (%p731_p8), [#allocation6], 4294967168  ;;  %208 = vrot.lane.b32.xlu0 %v204_v0, %s520_s20  ;;  %v330_v11 = vld [vmem:[%s713_s1] ss:$0 sm:$0xff]  ;;  %s332_s22 = sshll.u32 %s564_s16, 7  ;;  %s198_s24 = scalar_lea.vmem [#allocation7], %s327_s17 }
  0x48   : > { %v202_v2 = vand.u32 127, %v201_v1  ;;  %s240_s27 = sshll.u32 %s198_s24, 4  ;;  %s238_s30 = scalar_lea.hbm %s715_s3, %s332_s22  ;;  %s241_s27 = int_to_ptr.vmem [resolvable:$true] %s240_s27 }
  0x49   : > { %s227_s7 = scalar_lea.sflag [#allocation4], %s662_s10  ;;  %s448_s6 = scalar_lea.vmem %s241_s27, 128 }
  0x4a   : > { %vm203_vm0 = vcmp.lt.s32.totalorder %v202_v2, 16  ;;  %p449_p9 = scmp.ne.s32.totalorder %s241_s27, %s448_s6  ;;  %p732_p11 = scmp.ne.s32.totalorder %s726_s5, 0 }
  0x4b   : > { %205 = vrot.lane.b32.xlu0 %v204_v0, %s521_s11  ;;  %s522_s8 = smov [#allocation7]  }
  0x4c   : > { %p450_p13 = pnand %p449_p9, %p732_p11  ;;  %s452_s9 = sshll.u32 %s522_s8, 4  ;;  %s453_s9 = int_to_ptr.vmem [resolvable:$false] %s452_s9 }
  0x4d   : > { %s454_s16 = scalar_lea.vmem %s453_s9, 256  ;;  %p455_p1 = scmp.lt.s32.totalorder %s241_s27, %s453_s9 }
  0x4e   : > { %p451_p10 = pneg %p450_p13  ;;  %p456_p2 = scmp.lt.s32.totalorder %s454_s16, %s448_s6 }
  0x50   : > { %p457_p0 = por %p456_p2, %p455_p1 }
  0x52   : > { %p458_p3 = pnand %p457_p0, %p451_p10 }
  0xb9   : > { %v209_v3 = vpop.permute.xlu0 %208 }
  0xba   : > { %v210_v4 = vrot.slane %v209_v3, 7 }
  0xbc   : > { %v211_v5 = vsel %vm203_vm0, %v210_v4, %v209_v3 }
  0xbd   : > { %v212_v6 = vsub.f32 %v211_v5, %v204_v0  ;;  %v206_v7 = vpop.permute.xlu0 %205 }
  0xbe   : > { %v207_v9 = vsub.f32 %v206_v7, %v204_v0 }
  0xbf   : > { %v221_v10 = vmul.f32 %v212_v6, %v212_v6 }
  0xc0   : > { %v213_v12 = vmul.f32 %v207_v9, %v207_v9 }
  0xc1   : > { %v222_v13 = vmul.f32 %v221_v10, %v200_v8 }
  0xc2   : > { %v220_v14 = vmul.f32 %v330_v11, %v213_v12 }
  0xc4   : > { %v223_v15 = vadd.f32 %v222_v13, %v220_v14 }
  0xc6   : > { %225 = vst [vmem:[%s198_s24] sm:$0xff] %v223_v15 }
  0xc7   : > { %461 = shalt.err (!%p458_p3)
}
  0xc8   : > { %s462_s17 = scalar_lea.hbm %s238_s30, 128  ;;  %s466_s26 = scalar_lea.hbm %s715_s3, 256 }
  0xc9   : > { %p463_p12 = scmp.ne.s32.totalorder %s238_s30, %s462_s17  ;;  %p467_p6 = scmp.lt.s32.totalorder %s238_s30, %s715_s3 }
  0xca   : > { %p468_p4 = scmp.lt.s32.totalorder %s466_s26, %s462_s17 }
  0xcb   : > { %p464_p5 = pnand %p463_p12, %p732_p11 }
  0xcc   : > { %p469_p8 = por %p468_p4, %p467_p6 }
  0xcd   : > { %p465_p7 = pneg %p464_p5 }
  0xcf   : > { %p470_p9 = pnand %p469_p8, %p465_p7 }
  0xd1   : > { %473 = shalt.err (!%p470_p9)
}
  0xd2   : > { %341 = dma.vmem_to_hbm [thread:$0]  (%p732_p11), %s241_s27, 128, %s238_s30, %s227_s7  }
  0xd3 PF: > { %s252_s18 = sand.u32 1, %s504_s12   ;;  %p733_p13 = scmp.ne.s32.totalorder %s721_s19, 0 }
  0xd4   : > { %p734_p10 = scmp.ge.s32.totalorder %s516_s15, 2  ;;  %s253_s21 = scalar_lea.sflag [#allocation4], %s252_s18 }
  0xd6   : > { %p352_p1 = pnand %p734_p10, %p733_p13 }
  0xd8   : > { %p353_p2 = pneg %p352_p1 }
  0xda   : > { %499 = dma.done.wait (%p353_p2), %s253_s21, 128  }
  0xdb   : > { %501 = vsyncadd (%p353_p2), %s253_s21, 4294967168  ;;  %p17_p0 = scmp.ge.s32.totalorder %s591_s23, 4   ;;  %s735_s12 = smov %s508_s13 }
  0xdc   : > { %s736_s13 = smov %s512_s14  ;;  %s737_s14 = smov %s618_s4 }
  0xdd   : > { %s738_s15 = smov %s591_s23  ;;  %19 = sbr.rel (!%p17_p0) target bundleno = 6 (0x6), region = 81 }
  0xe2   :  { %258 = vsyncpa [#allocation3], 1 }
  0xe3   :  { %260 = vsyncpa [#allocation3 + $0x1], 1 }
  0xe4   :  { %261 = vsyncpa [#allocation6], 1 }
  0xe5   :  { %262 = vsyncpa [#allocation4], 1 }
  0xe6   :  { %264 = vsyncpa [#allocation4 + $0x1], 1 }

</bundles_post_ra>
